<compile_context>
chip_gen: v5e
topology: v5e:2x2
jax: 0.10.0
libtpu: 0.0.40
codegen_flags: <defaults>
</compile_context>

<pallas_src>
import functools

import jax
import jax.numpy as jnp
from jax import lax
from jax.experimental import pallas as pl
from jax.experimental.pallas import tpu as pltpu


def _round_up(x, m):
    return (x + m - 1) // m * m


def _embed_ln_kernel(ids_ref, table_ref, gamma_ref, beta_ref, out_ref,
                     gbuf, sem, *, eps, tile_tokens, in_flight):
    """Gather `tile_tokens` embedding rows from HBM, then LayerNorm the tile.

    ids_ref:   (T_pad,)     int32  SMEM  (scalar-prefetched token ids)
    table_ref: (V, H)              HBM   (pl.ANY, manual DMA row gather)
    gamma_ref: (1, H)              VMEM  LayerNorm weight
    beta_ref:  (1, H)              VMEM  LayerNorm bias
    out_ref:   (TT, H)             VMEM  output tile
    gbuf:      (TT, H)             VMEM  gathered-rows scratch
    sem:       (in_flight,)        DMA semaphores (in-flight window)
    """
    i = pl.program_id(0)
    base = i * tile_tokens

    def start_row(k, slot):
        tok = ids_ref[base + k]
        pltpu.make_async_copy(table_ref.at[tok], gbuf.at[k], sem.at[slot]).start()

    def wait_row(k, slot):
        tok = ids_ref[base + k]
        pltpu.make_async_copy(table_ref.at[tok], gbuf.at[k], sem.at[slot]).wait()

    # Prime the in-flight window (static unroll; in_flight is small).
    for w in range(in_flight):
        start_row(w, w)

    # For each row: wait its DMA, then reuse the semaphore slot to launch the
    # row `in_flight` positions ahead, keeping `in_flight` gathers in flight.
    @pl.loop(0, tile_tokens)
    def _(k):
        slot = k % in_flight
        wait_row(k, slot)
        nxt = k + in_flight

        @pl.when(nxt < tile_tokens)
        def _():
            start_row(nxt, slot)

    # LayerNorm over the hidden dim (math in f32 regardless of table dtype),
    # matching nn.LayerNorm(hidden_size, eps): biased variance, rsqrt.
    x = gbuf[...].astype(jnp.float32)                       # (TT, H)
    gamma = gamma_ref[...].astype(jnp.float32)              # (1, H) hoisted load
    beta = beta_ref[...].astype(jnp.float32)                # (1, H) hoisted load
    mean = jnp.mean(x, axis=-1, keepdims=True)
    centered = x - mean
    var = jnp.mean(centered * centered, axis=-1, keepdims=True)
    inv = lax.rsqrt(var + eps)
    y = centered * inv * gamma + beta

    # Dropout: nn.Dropout is identity in eval mode.
    # TODO(synk): training-mode stochastic dropout would use pltpu.prng_seed +
    # pltpu.prng_random_bits; the `input_embed is not None` branch (LN-only)
    # is not wired up here.
    out_ref[...] = y.astype(out_ref.dtype)


def modernbert_embeddings(input_ids, tok_table, gamma, beta, *, eps=1e-5,
                          tile_tokens=512, in_flight=8,
                          out_dtype=jnp.float32, pad_token_id=0):
    """input_ids: (B, S) int; tok_table: (V, H); gamma/beta: (H,)."""
    b, s = input_ids.shape
    v, h = tok_table.shape
    t = b * s

    # Token tile: multiple of 8, no larger than (padded) total token count.
    tt = min(int(tile_tokens), _round_up(t, 8))
    tt = max(8, _round_up(tt, 8))
    t_pad = _round_up(t, tt)

    ids_flat = input_ids.reshape(t).astype(jnp.int32)
    if t_pad != t:
        pad = jnp.full((t_pad - t,), pad_token_id, dtype=jnp.int32)
        ids_flat = jnp.concatenate([ids_flat, pad])

    gamma2 = gamma.reshape(1, h).astype(jnp.float32)
    beta2 = beta.reshape(1, h).astype(jnp.float32)

    nfly = max(1, min(int(in_flight), tt))

    kernel = functools.partial(_embed_ln_kernel, eps=float(eps),
                               tile_tokens=tt, in_flight=nfly)

    out_flat = pl.pallas_call(
        kernel,
        out_shape=jax.ShapeDtypeStruct((t_pad, h), out_dtype),
        grid_spec=pltpu.PrefetchScalarGridSpec(
            num_scalar_prefetch=1,                 # ids -> SMEM
            grid=(t_pad // tt,),
            in_specs=[
                # Embedding table stays in HBM; rows are DMA-gathered manually.
                pl.BlockSpec(memory_space=pl.ANY),
                # LayerNorm affine params, resident across the grid.
                pl.BlockSpec((1, h), lambda i, ids: (0, 0)),
                pl.BlockSpec((1, h), lambda i, ids: (0, 0)),
            ],
            out_specs=pl.BlockSpec((tt, h), lambda i, ids: (i, 0)),
            scratch_shapes=[
                pltpu.VMEM((tt, h), tok_table.dtype),     # gathered rows
                pltpu.SemaphoreType.DMA((nfly,)),         # in-flight window
            ],
        ),
        compiler_params=pltpu.CompilerParams(
            dimension_semantics=("parallel",)),
    )(ids_flat, tok_table, gamma2, beta2)

    return out_flat[:t].reshape(b, s, h)


def _reference(input_ids, tok_table, gamma, beta, eps=1e-5):
    emb = tok_table[input_ids]                     # (B, S, H)
    mean = emb.mean(axis=-1, keepdims=True)
    var = ((emb - mean) ** 2).mean(axis=-1, keepdims=True)
    return (emb - mean) / jnp.sqrt(var + eps) * gamma + beta


if __name__ == "__main__":
    # Small ModernBertConfig-like settings.
    vocab_size = 64
    hidden_size = 128
    pad_token_id = 0
    norm_eps = 1e-5
    batch, seq = 2, 8

    key = jax.random.PRNGKey(0)
    k_tab, k_ids = jax.random.split(key)

    # Deterministic parameter init (shapes from __init__):
    tok_table = 0.02 * jax.random.normal(
        k_tab, (vocab_size, hidden_size), dtype=jnp.float32)
    # nn.Embedding(padding_idx=pad_token_id) zeroes the padding row at init.
    tok_table = tok_table.at[pad_token_id].set(0.0)
    gamma = jnp.ones((hidden_size,), jnp.float32)   # LayerNorm weight
    beta = jnp.zeros((hidden_size,), jnp.float32)   # LayerNorm bias

    input_ids = jax.random.randint(
        k_ids, (batch, seq), 0, vocab_size, dtype=jnp.int32)

    out = modernbert_embeddings(input_ids, tok_table, gamma, beta,
                                eps=norm_eps, pad_token_id=pad_token_id)
    jax.block_until_ready(out)

    ref = _reference(input_ids, tok_table, gamma, beta, eps=norm_eps)
    assert out.shape == (batch, seq, hidden_size)
    assert jnp.allclose(out, ref, atol=1e-4, rtol=1e-4)

    print("KERNEL_OK")
</pallas_src>

<mosaic_0001>
module attributes {stable_mosaic.version = 11 : i64} {
  func.func @_embed_ln_kernel(%arg0: i32, %arg1: memref<16xi32, #tpu.memory_space<smem>>, %arg2: memref<64x128xf32, #tpu.memory_space<any>>, %arg3: memref<1x128xf32, #tpu.memory_space<vmem>>, %arg4: memref<1x128xf32, #tpu.memory_space<vmem>>, %arg5: memref<16x128xf32, #tpu.memory_space<vmem>>, %arg6: memref<16x128xf32, #tpu.memory_space<vmem>>, %arg7: memref<8x!tpu.dma_semaphore, #tpu.memory_space<semaphore_mem>>) attributes {dimension_semantics = [#tpu.dimension_semantics<parallel>], iteration_bounds = array<i64: 1>, scalar_prefetch = 1 : i64, scratch_operands = 2 : i64, tpu.core_type = #tpu.core_type<tc>, window_params = [{}, {pipeline_mode = #tpu.pipeline_mode<synchronous>, transform_indices = @transform_1, window_bounds = array<i64: 1, 128>}, {pipeline_mode = #tpu.pipeline_mode<synchronous>, transform_indices = @transform_2, window_bounds = array<i64: 1, 128>}, {transform_indices = @transform_3, window_bounds = array<i64: 16, 128>}]} {
    %c16_i32 = arith.constant 16 : i32
    %0 = arith.muli %arg0, %c16_i32 : i32
    %c0_i32 = arith.constant 0 : i32
    %1 = arith.addi %0, %c0_i32 : i32
    %2 = arith.index_cast %1 : i32 to index
    %3 = memref.load %arg1[%2] : memref<16xi32, #tpu.memory_space<smem>>
    %c0_i32_0 = arith.constant 0 : i32
    %c0_i32_1 = arith.constant 0 : i32
    %c0_i32_2 = arith.constant 0 : i32
    %4 = tpu.memref_slice %arg2[%3, %c0_i32_2] : memref<64x128xf32, #tpu.memory_space<any>> -> memref<1x128xf32, #tpu.memory_space<any>>
    %5 = tpu.memref_squeeze %4 : memref<1x128xf32, #tpu.memory_space<any>> -> memref<128xf32, #tpu.memory_space<any>>
    %c0_i32_3 = arith.constant 0 : i32
    %6 = tpu.memref_slice %arg6[%c0_i32_0, %c0_i32_3] : memref<16x128xf32, #tpu.memory_space<vmem>> -> memref<1x128xf32, #tpu.memory_space<vmem>>
    %7 = tpu.memref_squeeze %6 : memref<1x128xf32, #tpu.memory_space<vmem>> -> memref<128xf32, #tpu.memory_space<vmem>>
    %8 = tpu.memref_slice %arg7[%c0_i32_1] : memref<8x!tpu.dma_semaphore, #tpu.memory_space<semaphore_mem>> -> memref<1x!tpu.dma_semaphore, #tpu.memory_space<semaphore_mem>>
    %9 = tpu.memref_squeeze %8 : memref<1x!tpu.dma_semaphore, #tpu.memory_space<semaphore_mem>> -> memref<!tpu.dma_semaphore, #tpu.memory_space<semaphore_mem>>
    tpu.enqueue_dma source(%5 : memref<128xf32, #tpu.memory_space<any>>) target(%7 : memref<128xf32, #tpu.memory_space<vmem>>) target_semaphore(%9 : memref<!tpu.dma_semaphore, #tpu.memory_space<semaphore_mem>>)
    %c1_i32 = arith.constant 1 : i32
    %10 = arith.addi %0, %c1_i32 : i32
    %11 = arith.index_cast %10 : i32 to index
    %12 = memref.load %arg1[%11] : memref<16xi32, #tpu.memory_space<smem>>
    %c1_i32_4 = arith.constant 1 : i32
    %c1_i32_5 = arith.constant 1 : i32
    %c0_i32_6 = arith.constant 0 : i32
    %13 = tpu.memref_slice %arg2[%12, %c0_i32_6] : memref<64x128xf32, #tpu.memory_space<any>> -> memref<1x128xf32, #tpu.memory_space<any>>
    %14 = tpu.memref_squeeze %13 : memref<1x128xf32, #tpu.memory_space<any>> -> memref<128xf32, #tpu.memory_space<any>>
    %c0_i32_7 = arith.constant 0 : i32
    %15 = tpu.memref_slice %arg6[%c1_i32_4, %c0_i32_7] : memref<16x128xf32, #tpu.memory_space<vmem>> -> memref<1x128xf32, #tpu.memory_space<vmem>>
    %16 = tpu.memref_squeeze %15 : memref<1x128xf32, #tpu.memory_space<vmem>> -> memref<128xf32, #tpu.memory_space<vmem>>
    %17 = tpu.memref_slice %arg7[%c1_i32_5] : memref<8x!tpu.dma_semaphore, #tpu.memory_space<semaphore_mem>> -> memref<1x!tpu.dma_semaphore, #tpu.memory_space<semaphore_mem>>
    %18 = tpu.memref_squeeze %17 : memref<1x!tpu.dma_semaphore, #tpu.memory_space<semaphore_mem>> -> memref<!tpu.dma_semaphore, #tpu.memory_space<semaphore_mem>>
    tpu.enqueue_dma source(%14 : memref<128xf32, #tpu.memory_space<any>>) target(%16 : memref<128xf32, #tpu.memory_space<vmem>>) target_semaphore(%18 : memref<!tpu.dma_semaphore, #tpu.memory_space<semaphore_mem>>)
    %c2_i32 = arith.constant 2 : i32
    %19 = arith.addi %0, %c2_i32 : i32
    %20 = arith.index_cast %19 : i32 to index
    %21 = memref.load %arg1[%20] : memref<16xi32, #tpu.memory_space<smem>>
    %c2_i32_8 = arith.constant 2 : i32
    %c2_i32_9 = arith.constant 2 : i32
    %c0_i32_10 = arith.constant 0 : i32
    %22 = tpu.memref_slice %arg2[%21, %c0_i32_10] : memref<64x128xf32, #tpu.memory_space<any>> -> memref<1x128xf32, #tpu.memory_space<any>>
    %23 = tpu.memref_squeeze %22 : memref<1x128xf32, #tpu.memory_space<any>> -> memref<128xf32, #tpu.memory_space<any>>
    %c0_i32_11 = arith.constant 0 : i32
    %24 = tpu.memref_slice %arg6[%c2_i32_8, %c0_i32_11] : memref<16x128xf32, #tpu.memory_space<vmem>> -> memref<1x128xf32, #tpu.memory_space<vmem>>
    %25 = tpu.memref_squeeze %24 : memref<1x128xf32, #tpu.memory_space<vmem>> -> memref<128xf32, #tpu.memory_space<vmem>>
    %26 = tpu.memref_slice %arg7[%c2_i32_9] : memref<8x!tpu.dma_semaphore, #tpu.memory_space<semaphore_mem>> -> memref<1x!tpu.dma_semaphore, #tpu.memory_space<semaphore_mem>>
    %27 = tpu.memref_squeeze %26 : memref<1x!tpu.dma_semaphore, #tpu.memory_space<semaphore_mem>> -> memref<!tpu.dma_semaphore, #tpu.memory_space<semaphore_mem>>
    tpu.enqueue_dma source(%23 : memref<128xf32, #tpu.memory_space<any>>) target(%25 : memref<128xf32, #tpu.memory_space<vmem>>) target_semaphore(%27 : memref<!tpu.dma_semaphore, #tpu.memory_space<semaphore_mem>>)
    %c3_i32 = arith.constant 3 : i32
    %28 = arith.addi %0, %c3_i32 : i32
    %29 = arith.index_cast %28 : i32 to index
    %30 = memref.load %arg1[%29] : memref<16xi32, #tpu.memory_space<smem>>
    %c3_i32_12 = arith.constant 3 : i32
    %c3_i32_13 = arith.constant 3 : i32
    %c0_i32_14 = arith.constant 0 : i32
    %31 = tpu.memref_slice %arg2[%30, %c0_i32_14] : memref<64x128xf32, #tpu.memory_space<any>> -> memref<1x128xf32, #tpu.memory_space<any>>
    %32 = tpu.memref_squeeze %31 : memref<1x128xf32, #tpu.memory_space<any>> -> memref<128xf32, #tpu.memory_space<any>>
    %c0_i32_15 = arith.constant 0 : i32
    %33 = tpu.memref_slice %arg6[%c3_i32_12, %c0_i32_15] : memref<16x128xf32, #tpu.memory_space<vmem>> -> memref<1x128xf32, #tpu.memory_space<vmem>>
    %34 = tpu.memref_squeeze %33 : memref<1x128xf32, #tpu.memory_space<vmem>> -> memref<128xf32, #tpu.memory_space<vmem>>
    %35 = tpu.memref_slice %arg7[%c3_i32_13] : memref<8x!tpu.dma_semaphore, #tpu.memory_space<semaphore_mem>> -> memref<1x!tpu.dma_semaphore, #tpu.memory_space<semaphore_mem>>
    %36 = tpu.memref_squeeze %35 : memref<1x!tpu.dma_semaphore, #tpu.memory_space<semaphore_mem>> -> memref<!tpu.dma_semaphore, #tpu.memory_space<semaphore_mem>>
    tpu.enqueue_dma source(%32 : memref<128xf32, #tpu.memory_space<any>>) target(%34 : memref<128xf32, #tpu.memory_space<vmem>>) target_semaphore(%36 : memref<!tpu.dma_semaphore, #tpu.memory_space<semaphore_mem>>)
    %c4_i32 = arith.constant 4 : i32
    %37 = arith.addi %0, %c4_i32 : i32
    %38 = arith.index_cast %37 : i32 to index
    %39 = memref.load %arg1[%38] : memref<16xi32, #tpu.memory_space<smem>>
    %c4_i32_16 = arith.constant 4 : i32
    %c4_i32_17 = arith.constant 4 : i32
    %c0_i32_18 = arith.constant 0 : i32
    %40 = tpu.memref_slice %arg2[%39, %c0_i32_18] : memref<64x128xf32, #tpu.memory_space<any>> -> memref<1x128xf32, #tpu.memory_space<any>>
    %41 = tpu.memref_squeeze %40 : memref<1x128xf32, #tpu.memory_space<any>> -> memref<128xf32, #tpu.memory_space<any>>
    %c0_i32_19 = arith.constant 0 : i32
    %42 = tpu.memref_slice %arg6[%c4_i32_16, %c0_i32_19] : memref<16x128xf32, #tpu.memory_space<vmem>> -> memref<1x128xf32, #tpu.memory_space<vmem>>
    %43 = tpu.memref_squeeze %42 : memref<1x128xf32, #tpu.memory_space<vmem>> -> memref<128xf32, #tpu.memory_space<vmem>>
    %44 = tpu.memref_slice %arg7[%c4_i32_17] : memref<8x!tpu.dma_semaphore, #tpu.memory_space<semaphore_mem>> -> memref<1x!tpu.dma_semaphore, #tpu.memory_space<semaphore_mem>>
    %45 = tpu.memref_squeeze %44 : memref<1x!tpu.dma_semaphore, #tpu.memory_space<semaphore_mem>> -> memref<!tpu.dma_semaphore, #tpu.memory_space<semaphore_mem>>
    tpu.enqueue_dma source(%41 : memref<128xf32, #tpu.memory_space<any>>) target(%43 : memref<128xf32, #tpu.memory_space<vmem>>) target_semaphore(%45 : memref<!tpu.dma_semaphore, #tpu.memory_space<semaphore_mem>>)
    %c5_i32 = arith.constant 5 : i32
    %46 = arith.addi %0, %c5_i32 : i32
    %47 = arith.index_cast %46 : i32 to index
    %48 = memref.load %arg1[%47] : memref<16xi32, #tpu.memory_space<smem>>
    %c5_i32_20 = arith.constant 5 : i32
    %c5_i32_21 = arith.constant 5 : i32
    %c0_i32_22 = arith.constant 0 : i32
    %49 = tpu.memref_slice %arg2[%48, %c0_i32_22] : memref<64x128xf32, #tpu.memory_space<any>> -> memref<1x128xf32, #tpu.memory_space<any>>
    %50 = tpu.memref_squeeze %49 : memref<1x128xf32, #tpu.memory_space<any>> -> memref<128xf32, #tpu.memory_space<any>>
    %c0_i32_23 = arith.constant 0 : i32
    %51 = tpu.memref_slice %arg6[%c5_i32_20, %c0_i32_23] : memref<16x128xf32, #tpu.memory_space<vmem>> -> memref<1x128xf32, #tpu.memory_space<vmem>>
    %52 = tpu.memref_squeeze %51 : memref<1x128xf32, #tpu.memory_space<vmem>> -> memref<128xf32, #tpu.memory_space<vmem>>
    %53 = tpu.memref_slice %arg7[%c5_i32_21] : memref<8x!tpu.dma_semaphore, #tpu.memory_space<semaphore_mem>> -> memref<1x!tpu.dma_semaphore, #tpu.memory_space<semaphore_mem>>
    %54 = tpu.memref_squeeze %53 : memref<1x!tpu.dma_semaphore, #tpu.memory_space<semaphore_mem>> -> memref<!tpu.dma_semaphore, #tpu.memory_space<semaphore_mem>>
    tpu.enqueue_dma source(%50 : memref<128xf32, #tpu.memory_space<any>>) target(%52 : memref<128xf32, #tpu.memory_space<vmem>>) target_semaphore(%54 : memref<!tpu.dma_semaphore, #tpu.memory_space<semaphore_mem>>)
    %c6_i32 = arith.constant 6 : i32
    %55 = arith.addi %0, %c6_i32 : i32
    %56 = arith.index_cast %55 : i32 to index
    %57 = memref.load %arg1[%56] : memref<16xi32, #tpu.memory_space<smem>>
    %c6_i32_24 = arith.constant 6 : i32
    %c6_i32_25 = arith.constant 6 : i32
    %c0_i32_26 = arith.constant 0 : i32
    %58 = tpu.memref_slice %arg2[%57, %c0_i32_26] : memref<64x128xf32, #tpu.memory_space<any>> -> memref<1x128xf32, #tpu.memory_space<any>>
    %59 = tpu.memref_squeeze %58 : memref<1x128xf32, #tpu.memory_space<any>> -> memref<128xf32, #tpu.memory_space<any>>
    %c0_i32_27 = arith.constant 0 : i32
    %60 = tpu.memref_slice %arg6[%c6_i32_24, %c0_i32_27] : memref<16x128xf32, #tpu.memory_space<vmem>> -> memref<1x128xf32, #tpu.memory_space<vmem>>
    %61 = tpu.memref_squeeze %60 : memref<1x128xf32, #tpu.memory_space<vmem>> -> memref<128xf32, #tpu.memory_space<vmem>>
    %62 = tpu.memref_slice %arg7[%c6_i32_25] : memref<8x!tpu.dma_semaphore, #tpu.memory_space<semaphore_mem>> -> memref<1x!tpu.dma_semaphore, #tpu.memory_space<semaphore_mem>>
    %63 = tpu.memref_squeeze %62 : memref<1x!tpu.dma_semaphore, #tpu.memory_space<semaphore_mem>> -> memref<!tpu.dma_semaphore, #tpu.memory_space<semaphore_mem>>
    tpu.enqueue_dma source(%59 : memref<128xf32, #tpu.memory_space<any>>) target(%61 : memref<128xf32, #tpu.memory_space<vmem>>) target_semaphore(%63 : memref<!tpu.dma_semaphore, #tpu.memory_space<semaphore_mem>>)
    %c7_i32 = arith.constant 7 : i32
    %64 = arith.addi %0, %c7_i32 : i32
    %65 = arith.index_cast %64 : i32 to index
    %66 = memref.load %arg1[%65] : memref<16xi32, #tpu.memory_space<smem>>
    %c7_i32_28 = arith.constant 7 : i32
    %c7_i32_29 = arith.constant 7 : i32
    %c0_i32_30 = arith.constant 0 : i32
    %67 = tpu.memref_slice %arg2[%66, %c0_i32_30] : memref<64x128xf32, #tpu.memory_space<any>> -> memref<1x128xf32, #tpu.memory_space<any>>
    %68 = tpu.memref_squeeze %67 : memref<1x128xf32, #tpu.memory_space<any>> -> memref<128xf32, #tpu.memory_space<any>>
    %c0_i32_31 = arith.constant 0 : i32
    %69 = tpu.memref_slice %arg6[%c7_i32_28, %c0_i32_31] : memref<16x128xf32, #tpu.memory_space<vmem>> -> memref<1x128xf32, #tpu.memory_space<vmem>>
    %70 = tpu.memref_squeeze %69 : memref<1x128xf32, #tpu.memory_space<vmem>> -> memref<128xf32, #tpu.memory_space<vmem>>
    %71 = tpu.memref_slice %arg7[%c7_i32_29] : memref<8x!tpu.dma_semaphore, #tpu.memory_space<semaphore_mem>> -> memref<1x!tpu.dma_semaphore, #tpu.memory_space<semaphore_mem>>
    %72 = tpu.memref_squeeze %71 : memref<1x!tpu.dma_semaphore, #tpu.memory_space<semaphore_mem>> -> memref<!tpu.dma_semaphore, #tpu.memory_space<semaphore_mem>>
    tpu.enqueue_dma source(%68 : memref<128xf32, #tpu.memory_space<any>>) target(%70 : memref<128xf32, #tpu.memory_space<vmem>>) target_semaphore(%72 : memref<!tpu.dma_semaphore, #tpu.memory_space<semaphore_mem>>)
    %c0_i32_32 = arith.constant 0 : i32
    %c16_i32_33 = arith.constant 16 : i32
    %73 = arith.addi %c0_i32_32, %c16_i32_33 : i32
    %c1_i32_34 = arith.constant 1 : i32
    scf.for %arg8 = %c0_i32_32 to %73 step %c1_i32_34  : i32 {
      %c1_i32_47 = arith.constant 1 : i32
      %98 = arith.muli %arg8, %c1_i32_47 : i32
      %c0_i32_48 = arith.constant 0 : i32
      %99 = arith.addi %c0_i32_48, %98 : i32
      %c8_i32 = arith.constant 8 : i32
      %c0_i32_49 = arith.constant 0 : i32
      %100 = arith.cmpi eq, %c8_i32, %c0_i32_49 : i32
      %c1_i32_50 = arith.constant 1 : i32
      %101 = arith.select %100, %c1_i32_50, %c8_i32 : i32
      %102 = arith.remsi %99, %101 : i32
      %c0_i32_51 = arith.constant 0 : i32
      %103 = arith.cmpi ne, %102, %c0_i32_51 : i32
      %c0_i32_52 = arith.constant 0 : i32
      %104 = arith.cmpi slt, %102, %c0_i32_52 : i32
      %c0_i32_53 = arith.constant 0 : i32
      %105 = arith.cmpi slt, %101, %c0_i32_53 : i32
      %106 = arith.xori %104, %105 : i1
      %107 = arith.andi %106, %103 : i1
      %108 = arith.addi %102, %101 : i32
      %109 = arith.select %107, %108, %102 : i32
      %110 = arith.addi %0, %99 : i32
      %111 = arith.index_cast %110 : i32 to index
      %112 = memref.load %arg1[%111] : memref<16xi32, #tpu.memory_space<smem>>
      %c0_i32_54 = arith.constant 0 : i32
      %113 = tpu.memref_slice %arg2[%112, %c0_i32_54] : memref<64x128xf32, #tpu.memory_space<any>> -> memref<1x128xf32, #tpu.memory_space<any>>
      %114 = tpu.memref_squeeze %113 : memref<1x128xf32, #tpu.memory_space<any>> -> memref<128xf32, #tpu.memory_space<any>>
      %c0_i32_55 = arith.constant 0 : i32
      %115 = tpu.memref_slice %arg6[%99, %c0_i32_55] : memref<16x128xf32, #tpu.memory_space<vmem>> -> memref<1x128xf32, #tpu.memory_space<vmem>>
      %116 = tpu.memref_squeeze %115 : memref<1x128xf32, #tpu.memory_space<vmem>> -> memref<128xf32, #tpu.memory_space<vmem>>
      %117 = tpu.memref_slice %arg7[%109] : memref<8x!tpu.dma_semaphore, #tpu.memory_space<semaphore_mem>> -> memref<1x!tpu.dma_semaphore, #tpu.memory_space<semaphore_mem>>
      %118 = tpu.memref_squeeze %117 : memref<1x!tpu.dma_semaphore, #tpu.memory_space<semaphore_mem>> -> memref<!tpu.dma_semaphore, #tpu.memory_space<semaphore_mem>>
      tpu.wait_dma2 semaphore(%118 : memref<!tpu.dma_semaphore, #tpu.memory_space<semaphore_mem>>) src(%114 : memref<128xf32, #tpu.memory_space<any>>) dst(%116 : memref<128xf32, #tpu.memory_space<vmem>>)
      %c8_i32_56 = arith.constant 8 : i32
      %119 = arith.addi %99, %c8_i32_56 : i32
      %c16_i32_57 = arith.constant 16 : i32
      %120 = arith.cmpi slt, %119, %c16_i32_57 : i32
      %121 = arith.extui %120 : i1 to i32
      %c0_i32_58 = arith.constant 0 : i32
      %122 = arith.cmpi ne, %121, %c0_i32_58 : i32
      scf.if %122 {
        %123 = arith.addi %0, %119 : i32
        %124 = arith.index_cast %123 : i32 to index
        %125 = memref.load %arg1[%124] : memref<16xi32, #tpu.memory_space<smem>>
        %c0_i32_59 = arith.constant 0 : i32
        %126 = tpu.memref_slice %arg2[%125, %c0_i32_59] : memref<64x128xf32, #tpu.memory_space<any>> -> memref<1x128xf32, #tpu.memory_space<any>>
        %127 = tpu.memref_squeeze %126 : memref<1x128xf32, #tpu.memory_space<any>> -> memref<128xf32, #tpu.memory_space<any>>
        %c0_i32_60 = arith.constant 0 : i32
        %128 = tpu.memref_slice %arg6[%119, %c0_i32_60] : memref<16x128xf32, #tpu.memory_space<vmem>> -> memref<1x128xf32, #tpu.memory_space<vmem>>
        %129 = tpu.memref_squeeze %128 : memref<1x128xf32, #tpu.memory_space<vmem>> -> memref<128xf32, #tpu.memory_space<vmem>>
        %130 = tpu.memref_slice %arg7[%109] : memref<8x!tpu.dma_semaphore, #tpu.memory_space<semaphore_mem>> -> memref<1x!tpu.dma_semaphore, #tpu.memory_space<semaphore_mem>>
        %131 = tpu.memref_squeeze %130 : memref<1x!tpu.dma_semaphore, #tpu.memory_space<semaphore_mem>> -> memref<!tpu.dma_semaphore, #tpu.memory_space<semaphore_mem>>
        tpu.enqueue_dma source(%127 : memref<128xf32, #tpu.memory_space<any>>) target(%129 : memref<128xf32, #tpu.memory_space<vmem>>) target_semaphore(%131 : memref<!tpu.dma_semaphore, #tpu.memory_space<semaphore_mem>>)
      } else {
      }
    }
    %c16_i32_35 = arith.constant 16 : i32
    %c0 = arith.constant 0 : index
    %c0_36 = arith.constant 0 : index
    %74 = vector.load %arg6[%c0, %c0_36] : memref<16x128xf32, #tpu.memory_space<vmem>>, vector<16x128xf32>
    %c0_37 = arith.constant 0 : index
    %c0_38 = arith.constant 0 : index
    %75 = vector.load %arg3[%c0_37, %c0_38] : memref<1x128xf32, #tpu.memory_space<vmem>>, vector<1x128xf32>
    %c0_39 = arith.constant 0 : index
    %c0_40 = arith.constant 0 : index
    %76 = vector.load %arg4[%c0_39, %c0_40] : memref<1x128xf32, #tpu.memory_space<vmem>>, vector<1x128xf32>
    %cst = arith.constant dense<0.000000e+00> : vector<16xf32>
    %77 = vector.multi_reduction <add>, %74, %cst [1] : vector<16x128xf32> to vector<16xf32>
    %78 = vector.shape_cast %77 : vector<16xf32> to vector<16x1xf32>
    %cst_41 = arith.constant 1.280000e+02 : f32
    %79 = vector.broadcast %cst_41 : f32 to vector<16x1xf32>
    %80 = arith.divf %78, %79 : vector<16x1xf32>
    %81 = vector.broadcast %80 : vector<16x1xf32> to vector<16x128xf32>
    %82 = arith.subf %74, %81 : vector<16x128xf32>
    %83 = arith.mulf %82, %82 : vector<16x128xf32>
    %cst_42 = arith.constant dense<0.000000e+00> : vector<16xf32>
    %84 = vector.multi_reduction <add>, %83, %cst_42 [1] : vector<16x128xf32> to vector<16xf32>
    %85 = vector.shape_cast %84 : vector<16xf32> to vector<16x1xf32>
    %cst_43 = arith.constant 1.280000e+02 : f32
    %86 = vector.broadcast %cst_43 : f32 to vector<16x1xf32>
    %87 = arith.divf %85, %86 : vector<16x1xf32>
    %cst_44 = arith.constant 9.99999974E-6 : f32
    %88 = vector.broadcast %cst_44 : f32 to vector<16x1xf32>
    %89 = arith.addf %87, %88 : vector<16x1xf32>
    %90 = math.rsqrt %89 : vector<16x1xf32>
    %91 = vector.broadcast %90 : vector<16x1xf32> to vector<16x128xf32>
    %92 = arith.mulf %82, %91 : vector<16x128xf32>
    %93 = vector.broadcast %75 : vector<1x128xf32> to vector<16x128xf32>
    %94 = arith.mulf %92, %93 : vector<16x128xf32>
    %95 = vector.broadcast %76 : vector<1x128xf32> to vector<16x128xf32>
    %96 = arith.addf %94, %95 : vector<16x128xf32>
    %c0_45 = arith.constant 0 : index
    %c0_46 = arith.constant 0 : index
    %97 = vector.load %arg5[%c0_45, %c0_46] : memref<16x128xf32, #tpu.memory_space<vmem>>, vector<16x128xf32>
    tpu.vector_store %arg5[%c0_45, %c0_46], %96 {strides = array<i32>} : memref<16x128xf32, #tpu.memory_space<vmem>>, vector<16x128xf32>,
    return
  }
  func.func @transform_1(%arg0: i32, %arg1: memref<16xi32, #tpu.memory_space<smem>>) -> (i32, i32) {
    %c0_i32 = arith.constant 0 : i32
    %c0_i32_0 = arith.constant 0 : i32
    %c0_i32_1 = arith.constant 0 : i32
    return %c0_i32, %c0_i32_0 : i32, i32
  }
  func.func @transform_2(%arg0: i32, %arg1: memref<16xi32, #tpu.memory_space<smem>>) -> (i32, i32) {
    %c0_i32 = arith.constant 0 : i32
    %c0_i32_0 = arith.constant 0 : i32
    %c0_i32_1 = arith.constant 0 : i32
    return %c0_i32, %c0_i32_0 : i32, i32
  }
  func.func @transform_3(%arg0: i32, %arg1: memref<16xi32, #tpu.memory_space<smem>>) -> (i32, i32) {
    %c0_i32 = arith.constant 0 : i32
    %c0_i32_0 = arith.constant 0 : i32
    return %arg0, %c0_i32 : i32, i32
  }
}

</mosaic_0001>

<bundles_post_ra>
// kernel: tpu_custom_call.1
= control target key start
LH: loop header
LB: loop body
LE: loop exit
PB: predicated region body
PF: predicated region fallthrough
CT: control target
= control target key end

     0   :  { %s685_s18 = smov [#allocation5]   ;;  %s860_s0 = inlined_call_operand.hbm [shape: s32[16], index: 0, kind: input, shape index: {}]   ;;  %s861_s1 = inlined_call_operand.hbm [shape: f32[64,128], index: 1, kind: input, shape index: {}]   ;;  %s862_s2 = inlined_call_operand.vmem [shape: f32[1,128], index: 2, kind: input, shape index: {}]   ;;  %s863_s3 = inlined_call_operand.vmem [shape: f32[1,128], index: 3, kind: input, shape index: {}]   ;;  %s864_s4 = inlined_call_operand.hbm [shape: f32[16,128], index: 4, kind: output, shape index: {}]  }
   0x1   :  { %s10_s17 = sshll.u32 %s860_s0, 4  ;;  %s11_s17 = int_to_ptr.hbm [resolvable:$true] %s10_s17 }
   0x2   :  { %13 = dma.hbm_to_smem %s11_s17, 16, %s685_s18, [#allocation4] }
   0x3   :  { %675 = dma.done.wait [#allocation4], 16 }
   0x4   :  { %676 = vsyncadd [#allocation4], 4294967280 }
   0x5   :  { %16 = sfence }
   0x6   :  { %17 = vsyncpa [#allocation7], 0  ;;  %s23_s19 = sld [smem:[#allocation5]]  ;;  %s686_s20 = smov [#allocation2]  }
   0x7   :  { %s34_s21 = sshll.u32 %s686_s20, 4  ;;  %s362_s22 = sld [smem:[#allocation5 + $0x1]]  ;;  %s35_s21 = int_to_ptr.vmem [resolvable:$true] %s34_s21 }
   0x8   :  { %s687_s23 = smov [#allocation2 + $0x1]   ;;  %s729_s25 = sld [smem:[#allocation5 + $0x2]] }
   0x9   :  { %s727_s24 = sshll.u32 %s687_s23, 4  ;;  %s688_s0 = smov [#allocation2 + $0x2]   ;;  %s53_s24 = int_to_ptr.vmem [resolvable:$true] %s727_s24 }
   0xa   :  { %s732_s26 = sshll.u32 %s688_s0, 4  ;;  %s734_s27 = sld [smem:[#allocation5 + $0x3]]  ;;  %s71_s26 = int_to_ptr.vmem [resolvable:$true] %s732_s26 }
   0xb   :  { %s746_s14 = scalar_lea.hbm %s861_s1, 64 }
   0xc   :  { %s24_s30 = scalar_lea.hbm %s861_s1, %s23_s19 }
   0xd   :  { %s32_s5 = sshll.u32 %s24_s30, 4  ;;  %s40_s8 = scalar_lea.hbm %s861_s1, %s362_s22  ;;  %s33_s5 = int_to_ptr.hbm [resolvable:$true] %s32_s5 }
   0xe   :  { %s50_s9 = sshll.u32 %s40_s8, 4  ;;  %s427_s10 = sshra.s32 %s33_s5, 4  ;;  %s428_s10 = int_to_ptr.hbm [resolvable:$true] %s427_s10  ;;  %s51_s9 = int_to_ptr.hbm [resolvable:$true] %s50_s9 }
   0xf   :  { %s429_s11 = scalar_lea.hbm %s428_s10, 1  ;;  %p432_p1 = scmp.lt.s32.totalorder %s428_s10, %s861_s1 }
  0x10   :  { %p430_p0 = scmp.ne.s32.totalorder %s428_s10, %s429_s11  ;;  %p433_p2 = scmp.lt.s32.totalorder %s746_s14, %s429_s11 }
  0x12   :  { %p434_p3 = por %p433_p2, %p432_p1 }
  0x14   :  { %p435_p4 = pnand %p434_p3, %p430_p0 }
  0x16   :  { %438 = shalt.err (!%p435_p4)  }
  0x17   :  { %37 = dma.hbm_to_vmem [thread:$0]  %s33_s5, 16, %s35_s21, [#allocation3] }
  0x18   :  { %s58_s19 = scalar_lea.hbm %s861_s1, %s729_s25  ;;  %s451_s20 = sshra.s32 %s51_s9, 4  ;;  %s452_s20 = int_to_ptr.hbm [resolvable:$true] %s451_s20 }
  0x19   :  { %s453_s22 = scalar_lea.hbm %s452_s20, 1  ;;  %p456_p6 = scmp.lt.s32.totalorder %s452_s20, %s861_s1 }
  0x1a   :  { %p454_p5 = scmp.ne.s32.totalorder %s452_s20, %s453_s22  ;;  %p457_p7 = scmp.lt.s32.totalorder %s746_s14, %s453_s22 }
  0x1c   :  { %p458_p8 = por %p457_p7, %p456_p6 }
  0x1e   :  { %p459_p9 = pnand %p458_p8, %p454_p5 }
  0x20   :  { %462 = shalt.err (!%p459_p9)  }
  0x21   :  { %55 = dma.hbm_to_vmem [thread:$0]  %s51_s9, 16, %s53_s24, [#allocation3 + $0x1] }
  0x22   :  { %s68_s21 = sshll.u32 %s58_s19, 4  ;;  %s76_s29 = scalar_lea.hbm %s861_s1, %s734_s27  ;;  %s69_s21 = int_to_ptr.hbm [resolvable:$true] %s68_s21 }
  0x23   :  { %s86_s30 = sshll.u32 %s76_s29, 4  ;;  %s475_s5 = sshra.s32 %s69_s21, 4  ;;  %s476_s5 = int_to_ptr.hbm [resolvable:$true] %s475_s5  ;;  %s87_s30 = int_to_ptr.hbm [resolvable:$true] %s86_s30 }
  0x24   :  { %s477_s6 = scalar_lea.hbm %s476_s5, 1  ;;  %p480_p11 = scmp.lt.s32.totalorder %s476_s5, %s861_s1 }
  0x25   :  { %p478_p10 = scmp.ne.s32.totalorder %s476_s5, %s477_s6  ;;  %p481_p12 = scmp.lt.s32.totalorder %s746_s14, %s477_s6 }
  0x27   :  { %p482_p13 = por %p481_p12, %p480_p11 }
  0x29   :  { %p483_p0 = pnand %p482_p13, %p478_p10 }
  0x2b   :  { %486 = shalt.err (!%p483_p0)  }
  0x2c   :  { %73 = dma.hbm_to_vmem [thread:$0]  %s69_s21, 16, %s71_s26, [#allocation3 + $0x2] }
  0x2d   :  { %s689_s24 = smov [#allocation2 + $0x3]   ;;  %s365_s9 = sld [smem:[#allocation5 + $0x4]] }
  0x2e   :  { %s88_s27 = sshll.u32 %s689_s24, 4  ;;  %s499_s10 = sshra.s32 %s87_s30, 4  ;;  %s89_s27 = int_to_ptr.vmem [resolvable:$true] %s88_s27  ;;  %s500_s10 = int_to_ptr.hbm [resolvable:$true] %s499_s10 }
  0x2f   :  { %s501_s11 = scalar_lea.hbm %s500_s10, 1  ;;  %p504_p2 = scmp.lt.s32.totalorder %s500_s10, %s861_s1 }
  0x30   :  { %p502_p1 = scmp.ne.s32.totalorder %s500_s10, %s501_s11  ;;  %p505_p3 = scmp.lt.s32.totalorder %s746_s14, %s501_s11 }
  0x32   :  { %p506_p4 = por %p505_p3, %p504_p2 }
  0x34   :  { %p507_p5 = pnand %p506_p4, %p502_p1 }
  0x36   :  { %510 = shalt.err (!%p507_p5)  }
  0x37   :  { %91 = dma.hbm_to_vmem [thread:$0]  %s87_s30, 16, %s89_s27, [#allocation3 + $0x3] }
  0x38   :  { %s690_s15 = smov [#allocation2 + $0x4]   ;;  %s366_s16 = sld [smem:[#allocation5 + $0x5]] }
  0x39   :  { %s106_s26 = sshll.u32 %s690_s15, 4  ;;  %s691_s17 = smov [#allocation2 + $0x5]   ;;  %s107_s26 = int_to_ptr.vmem [resolvable:$true] %s106_s26 }
  0x3a   :  { %s776_s18 = sshll.u32 %s691_s17, 4  ;;  %s367_s19 = sld [smem:[#allocation5 + $0x6]]  ;;  %s125_s18 = int_to_ptr.vmem [resolvable:$true] %s776_s18 }
  0x3b   :  { %s94_s23 = scalar_lea.hbm %s861_s1, %s365_s9  ;;  %s692_s21 = smov [#allocation2 + $0x6]  }
  0x3c   :  { %s104_s0 = sshll.u32 %s94_s23, 4  ;;  %s782_s28 = sshll.u32 %s692_s21, 4  ;;  %s105_s0 = int_to_ptr.hbm [resolvable:$true] %s104_s0  ;;  %s143_s28 = int_to_ptr.vmem [resolvable:$true] %s782_s28 }
  0x3d   :  { %s523_s25 = sshra.s32 %s105_s0, 4  ;;  %s524_s25 = int_to_ptr.hbm [resolvable:$true] %s523_s25 }
  0x3e   :  { %s525_s29 = scalar_lea.hbm %s524_s25, 1  ;;  %p528_p7 = scmp.lt.s32.totalorder %s524_s25, %s861_s1 }
  0x3f   :  { %p526_p6 = scmp.ne.s32.totalorder %s524_s25, %s525_s29  ;;  %p529_p8 = scmp.lt.s32.totalorder %s746_s14, %s525_s29 }
  0x41   :  { %p530_p9 = por %p529_p8, %p528_p7 }
  0x43   :  { %p531_p10 = pnand %p530_p9, %p526_p6 }
  0x45   :  { %534 = shalt.err (!%p531_p10)  }
  0x46   :  { %109 = dma.hbm_to_vmem [thread:$0]  %s105_s0, 16, %s107_s26, [#allocation3 + $0x4] }
  0x47   :  { %s112_s8 = scalar_lea.hbm %s861_s1, %s366_s16  ;;  %s130_s10 = scalar_lea.hbm %s861_s1, %s367_s19 }
  0x48   :  { %s122_s24 = sshll.u32 %s112_s8, 4  ;;  %s140_s11 = sshll.u32 %s130_s10, 4  ;;  %s123_s24 = int_to_ptr.hbm [resolvable:$true] %s122_s24  ;;  %s141_s11 = int_to_ptr.hbm [resolvable:$true] %s140_s11 }
  0x49   :  { %s547_s12 = sshra.s32 %s123_s24, 4  ;;  %s548_s12 = int_to_ptr.hbm [resolvable:$true] %s547_s12 }
  0x4a   :  { %s549_s13 = scalar_lea.hbm %s548_s12, 1  ;;  %p552_p12 = scmp.lt.s32.totalorder %s548_s12, %s861_s1 }
  0x4b   :  { %p550_p11 = scmp.ne.s32.totalorder %s548_s12, %s549_s13  ;;  %p553_p13 = scmp.lt.s32.totalorder %s746_s14, %s549_s13 }
  0x4d   :  { %p554_p0 = por %p553_p13, %p552_p12 }
  0x4f   :  { %p555_p1 = pnand %p554_p0, %p550_p11 }
  0x51   :  { %558 = shalt.err (!%p555_p1)  }
  0x52   :  { %127 = dma.hbm_to_vmem [thread:$0]  %s123_s24, 16, %s125_s18, [#allocation3 + $0x5] }
  0x53   :  { %s368_s16 = sld [smem:[#allocation5 + $0x7]]  ;;  %s571_s17 = sshra.s32 %s141_s11, 4  ;;  %s572_s17 = int_to_ptr.hbm [resolvable:$true] %s571_s17 }
  0x54   :  { %s573_s19 = scalar_lea.hbm %s572_s17, 1  ;;  %p576_p3 = scmp.lt.s32.totalorder %s572_s17, %s861_s1 }
  0x55   :  { %p574_p2 = scmp.ne.s32.totalorder %s572_s17, %s573_s19  ;;  %p577_p4 = scmp.lt.s32.totalorder %s746_s14, %s573_s19 }
  0x57   :  { %p578_p5 = por %p577_p4, %p576_p3 }
  0x59   :  { %p579_p6 = pnand %p578_p5, %p574_p2 }
  0x5b   :  { %582 = shalt.err (!%p579_p6)  }
  0x5c   :  { %145 = dma.hbm_to_vmem [thread:$0]  %s141_s11, 16, %s143_s28, [#allocation3 + $0x6] }
  0x5d   :  { %s693_s23 = smov [#allocation2 + $0x7]   ;;  %s148_s25 = scalar_lea.hbm %s861_s1, %s368_s16 }
  0x5e   :  { %s160_s0 = sshll.u32 %s693_s23, 4  ;;  %s158_s29 = sshll.u32 %s148_s25, 4  ;;  %s161_s0 = int_to_ptr.vmem [resolvable:$true] %s160_s0  ;;  %s159_s29 = int_to_ptr.hbm [resolvable:$true] %s158_s29 }
  0x5f   :  { %s595_s30 = sshra.s32 %s159_s29, 4  ;;  %s596_s30 = int_to_ptr.hbm [resolvable:$true] %s595_s30 }
  0x60   :  { %s597_s5 = scalar_lea.hbm %s596_s30, 1  ;;  %p600_p8 = scmp.lt.s32.totalorder %s596_s30, %s861_s1 }
  0x61   :  { %p598_p7 = scmp.ne.s32.totalorder %s596_s30, %s597_s5  ;;  %p601_p9 = scmp.lt.s32.totalorder %s746_s14, %s597_s5 }
  0x63   :  { %p602_p10 = por %p601_p9, %p600_p8 }
  0x65   :  { %p603_p11 = pnand %p602_p10, %p598_p7 }
  0x67   :  { %606 = shalt.err (!%p603_p11)  }
  0x68   :  { %163 = dma.hbm_to_vmem [thread:$0]  %s159_s29, 16, %s161_s0, [#allocation3 + $0x7] }
  0x69   :  { %s812_s28 = smov 0  }
  0x6a LB: > { %p170_p12 = scmp.lt.s32.totalorder %s683_s28, 0  ;;  %s171_s8 = ssub.s32 0, %s683_s28  ;;  %s683_s28 = sphi %s812_s28, %s169_s28  }
  0x6b   : > { %s369_s24 = smin.u32 %s683_s28, %s171_s8 }
  0x6c   : > { %s173_s27 = sand.u32 7, %s369_s24  }
  0x6d   : > { %s174_s9 = ssub.s32 0, %s173_s27 }
  0x6e   : > { %s867_s9 = smov (!%p170_p12, %s174_s9), %s173_s27 }
  0x6f   : > { %p371_p13 = scmp.lt.s32.totalorder %s867_s9, 0  ;;  %s180_s10 = sadd.s32 8, %s867_s9 }
  0x71   : > { %s869_s10 = smov (!%p371_p13, %s180_s10), %s867_s9 }
  0x72   : > { %s820_s11 = scalar_lea.sflag [#allocation3], %s869_s10 }
  0x73   : > { %677 = dma.done.wait %s820_s11, 16 }
  0x74   : > { %678 = vsyncadd %s820_s11, 4294967280  ;;  %s187_s12 = sadd.s32 8, %s683_s28  ;;  %s355_s16 = scalar_lea.vmem [#allocation2], %s683_s28 }
  0x75   : > { %p825_p0 = scmp.lt.s32.totalorder %s187_s12, 16  ;;  %s356_s17 = scalar_lea.vmem %s355_s16, 8 [#allocation2] }
  0x76   : > { %s205_s19 = sshll.u32 %s356_s17, 4  ;;  %s206_s19 = int_to_ptr.vmem [resolvable:$true] %s205_s19 }
  0x77   : > { %s382_s15 = scalar_select %p825_p0, [#allocation5], [#allocation28] }
  0x78   : > { %s871_s12 = smov (!%p825_p0, %s187_s12), 0 }
  0x79   : > { %s193_s26 = sld [smem:[%s382_s15 + %s871_s12]] }
  0x7f   : > { %s194_s23 = scalar_lea.hbm %s861_s1, %s193_s26 }
  0x80   : > { %s203_s0 = sshll.u32 %s194_s23, 4  ;;  %s204_s0 = int_to_ptr.hbm [resolvable:$true] %s203_s0 }
  0x81   : > { %s619_s21 = sshra.s32 %s204_s0, 4  ;;  %s620_s21 = int_to_ptr.hbm [resolvable:$true] %s619_s21 }
  0x82   : > { %s621_s18 = scalar_lea.hbm %s620_s21, 1  ;;  %p626_p4 = scmp.lt.s32.totalorder %s620_s21, %s861_s1 }
  0x83   : > { %p622_p1 = scmp.ne.s32.totalorder %s620_s21, %s621_s18  ;;  %p627_p5 = scmp.lt.s32.totalorder %s746_s14, %s621_s18 }
  0x85   : > { %p623_p2 = pnand %p622_p1, %p825_p0  ;;  %p628_p6 = por %p627_p5, %p626_p4 }
  0x87   : > { %p624_p3 = pneg %p623_p2 }
  0x89   : > { %p629_p7 = pnand %p628_p6, %p624_p3 }
  0x8b   : > { %632 = shalt.err (!%p629_p7)  }
  0x8c   : > { %s633_s30 = sshra.s32 %s206_s19, 4  ;;  %s694_s6 = smov [#allocation2]   ;;  %s634_s30 = int_to_ptr.vmem [resolvable:$true] %s633_s30 }
  0x8d   : > { %s635_s5 = scalar_lea.vmem %s634_s30, 1  ;;  %s639_s7 = scalar_lea.vmem %s694_s6, 16 }
  0x8e   : > { %p636_p8 = scmp.ne.s32.totalorder %s634_s30, %s635_s5  ;;  %p640_p11 = scmp.lt.s32.totalorder %s634_s30, [#allocation2] }
  0x8f   : > { %p641_p12 = scmp.lt.s32.totalorder %s639_s7, %s635_s5 }
  0x90   : > { %p637_p9 = pnand %p636_p8, %p825_p0 }
  0x91   : > { %p642_p13 = por %p641_p12, %p640_p11 }
  0x92   : > { %p638_p10 = pneg %p637_p9 }
  0x94   : > { %p643_p1 = pnand %p642_p13, %p638_p10 }
  0x96   : > { %646 = shalt.err (!%p643_p1)  }
  0x97   : > { %384 = dma.hbm_to_vmem [thread:$0]  (%p825_p0), %s204_s0, 16, %s206_s19, %s820_s11 }
  0x98   : > { %s169_s28 = sadd.s32 1, %s683_s28  }
  0x99   : > { %p166_p2 = scmp.ge.s32.totalorder %s169_s28, 16  }
  0x9a   :  { %v209_v0 = vld [vmem:[#allocation2] sm:$0xff] (%p166_p2)  ;;  %v210_v1 = vld [vmem:[#allocation2 + $0x8] sm:$0xff] (%p166_p2)  ;;  %v695_v2 = vmov (%p166_p2), 128.0   ;;  %s696_s24 = smov (%p166_p2), [#allocation6]   ;;  %s278_s10 = sshll.u32 (%p166_p2), %s864_s4, 4  ;;  %s279_s10 = int_to_ptr.hbm [resolvable:$true] %s278_s10 }
  0x9b   :  { %168 = sbr.rel (!%p166_p2) target bundleno = 106 (0x6a), region = 107  ;;  %213 = vadd.xlane.f32.xlu0 (%p166_p2), %v209_v0  ;;  %409 = vrcp.f32 (%p166_p2), %v695_v2  ;;  %v407_v31 = vld [vmem:[%s862_s2] ss:$0 sm:$0xff] (%p166_p2)  ;;  %s276_s2 = sshll.u32 (%p166_p2), %s696_s24, 4  ;;  %s277_s2 = int_to_ptr.vmem [resolvable:$true] %s276_s2 }
  0x9c   :  { %v408_v35 = vld [vmem:[%s863_s3] ss:$0 sm:$0xff] (%p166_p2)  ;;  %s697_s3 = smov (%p166_p2), 128   ;;  %s698_s11 = smov (%p166_p2), 8  }
  0xa1   :  { %v410_v3 = vpop.eup %409 }
  0xa2   :  { %v218_v4 = vmul.f32 128.0, %v410_v3  ;;  %vm222_vm0 = vweird.f32 %v410_v3 }
  0xa3   :  { %215 = vadd.xlane.f32.xlu0 %v210_v1 }
  0xa4   :  { %v219_v5 = vsub.f32 1.0, %v218_v4 }
  0xa6   :  { %v220_v6 = vmul.f32 %v410_v3, %v219_v5 }
  0xa8   :  { %v221_v7 = vadd.f32 %v410_v3, %v220_v6 }
  0xaa   :  { %v223_v8 = vsel %vm222_vm0, %v410_v3, %v221_v7 }
 0x10e   :  { %v214_v9 = vpop.xlane.xlu0 %213 }
 0x10f   :  { %v224_v10 = vmul.f32 %v223_v8, %v214_v9 }
 0x111   :  { %v226_v11 = vsub.f32 %v209_v0, %v224_v10 }
 0x113   :  { %v228_v12 = vmul.f32 %v226_v11, %v226_v11 }
 0x115   :  { %230 = vadd.xlane.f32.xlu1 %v228_v12 }
 0x116   :  { %v216_v13 = vpop.xlane.xlu0 %215 }
 0x117   :  { %v225_v14 = vmul.f32 %v223_v8, %v216_v13 }
 0x119   :  { %v227_v15 = vsub.f32 %v210_v1, %v225_v14 }
 0x11b   :  { %v229_v16 = vmul.f32 %v227_v15, %v227_v15 }
 0x11d   :  { %232 = vadd.xlane.f32.xlu1 %v229_v16 }
 0x188   :  { %v231_v17 = vpop.xlane.xlu1 %230 }
 0x189   :  { %v234_v18 = vmul.f32 %v231_v17, %v223_v8 }
 0x18b   :  { %v236_v19 = vadd.f32 1e-05, %v234_v18 }
 0x18d   :  { %411 = vrsqrt.f32 %v236_v19  ;;  %vm244_vm2 = vweird.f32 %v236_v19 }
 0x190   :  { %v233_v20 = vpop.xlane.xlu1 %232 }
 0x191   :  { %v235_v21 = vmul.f32 %v233_v20, %v223_v8 }
 0x193   :  { %v412_v22 = vpop.eup %411  ;;  %v237_v23 = vadd.f32 1e-05, %v235_v21 }
 0x194   :  { %v239_v24 = vmul.f32 %v412_v22, %v236_v19  ;;  %vm245_vm1 = vweird.f32 %v412_v22 }
 0x195   :  { %413 = vrsqrt.f32 %v237_v23  ;;  %vm246_vm3 = vmor %vm244_vm2, %vm245_vm1  ;;  %vm254_vm5 = vweird.f32 %v237_v23 }
 0x196   :  { %v240_v25 = vmul.f32 %v412_v22, %v239_v24 }
 0x198   :  { %v241_v26 = vmul.f32 0.5, %v240_v25 }
 0x19a   :  { %v242_v27 = vsub.f32 1.5, %v241_v26 }
 0x19b   :  { %v414_v28 = vpop.eup %413 }
 0x19c   :  { %v243_v29 = vmul.f32 %v412_v22, %v242_v27  ;;  %v249_v30 = vmul.f32 %v414_v28, %v237_v23  ;;  %vm255_vm4 = vweird.f32 %v414_v28 }
 0x19d   :  { %vm256_vm6 = vmor %vm254_vm5, %vm255_vm4 }
 0x19e   :  { %v247_v32 = vsel %vm246_vm3, %v412_v22, %v243_v29  ;;  %v250_v33 = vmul.f32 %v414_v28, %v249_v30 }
 0x19f   :  { %v258_v34 = vmul.f32 %v247_v32, %v226_v11 }
 0x1a0   :  { %v251_v36 = vmul.f32 0.5, %v250_v33 }
 0x1a1   :  { %v263_v37 = vmul.f32 %v407_v31, %v258_v34 }
 0x1a2   :  { %v252_v38 = vsub.f32 1.5, %v251_v36 }
 0x1a3   :  { %v268_v39 = vadd.f32 %v408_v35, %v263_v37 }
 0x1a4   :  { %v253_v40 = vmul.f32 %v414_v28, %v252_v38 }
 0x1a5   :  { %270 = vst [vmem:[#allocation6] sm:$0xff] %v268_v39 }
 0x1a6   :  { %v257_v41 = vsel %vm256_vm6, %v414_v28, %v253_v40 }
 0x1a7   :  { %v259_v42 = vmul.f32 %v257_v41, %v227_v15 }
 0x1a9   :  { %v264_v43 = vmul.f32 %v407_v31, %v259_v42 }
 0x1ab   :  { %v269_v44 = vadd.f32 %v408_v35, %v264_v43 }
 0x1ad   :  { %271 = vst [vmem:[#allocation6 + $0x8] sm:$0xff] %v269_v44 }
 0x1ae   :  { %284 = dma.vmem_to_hbm [thread:$0]  %s277_s2, 256, %s279_s10, [#allocation7], %s697_s3, %s697_s3, %s698_s11  }
 0x1af   :  { %679 = dma.done.wait [#allocation7], 256  }
 0x1b0   :  { %680 = vsyncadd [#allocation7], 4294967040 }
 0x1b1   :  { %289 = vsyncpa [#allocation7], 1 }
 0x1b2   :  { %290 = vsyncmov [#allocation3] }
 0x1b5   :  { %s291_s12 = vpop.sfrf %290 }
 0x1b6   :  { %p373_p0 = scmp.ne.s32.totalorder %s291_s12, 0 }
 0x1b8   :  { %295 = shalt.err (%p373_p0)  }
 0x1b9   :  { %297 = vsyncmov [#allocation3 + $0x1] }
 0x1bc   :  { %s298_s13 = vpop.sfrf %297 }
 0x1bd   :  { %p374_p3 = scmp.ne.s32.totalorder %s298_s13, 0 }
 0x1bf   :  { %302 = shalt.err (%p374_p3)  }
 0x1c0   :  { %304 = vsyncmov [#allocation3 + $0x2] }
 0x1c3   :  { %s305_s4 = vpop.sfrf %304 }
 0x1c4   :  { %p375_p4 = scmp.ne.s32.totalorder %s305_s4, 0 }
 0x1c6   :  { %309 = shalt.err (%p375_p4)  }
 0x1c7   :  { %311 = vsyncmov [#allocation3 + $0x3] }
 0x1ca   :  { %s312_s15 = vpop.sfrf %311 }
 0x1cb   :  { %p376_p5 = scmp.ne.s32.totalorder %s312_s15, 0 }
 0x1cd   :  { %316 = shalt.err (%p376_p5)  }
 0x1ce   :  { %318 = vsyncmov [#allocation3 + $0x4] }
 0x1d1   :  { %s319_s26 = vpop.sfrf %318 }
 0x1d2   :  { %p377_p6 = scmp.ne.s32.totalorder %s319_s26, 0 }
 0x1d4   :  { %323 = shalt.err (%p377_p6)  }
 0x1d5   :  { %325 = vsyncmov [#allocation3 + $0x5] }
 0x1d8   :  { %s326_s16 = vpop.sfrf %325 }
 0x1d9   :  { %p378_p7 = scmp.ne.s32.totalorder %s326_s16, 0 }
 0x1db   :  { %330 = shalt.err (%p378_p7)  }
 0x1dc   :  { %332 = vsyncmov [#allocation3 + $0x6] }
 0x1df   :  { %s333_s17 = vpop.sfrf %332 }
 0x1e0   :  { %p379_p8 = scmp.ne.s32.totalorder %s333_s17, 0 }
 0x1e2   :  { %337 = shalt.err (%p379_p8)  }
 0x1e3   :  { %339 = vsyncmov [#allocation3 + $0x7] }
 0x1e6   :  { %s340_s19 = vpop.sfrf %339 }
 0x1e7   :  { %p380_p9 = scmp.ne.s32.totalorder %s340_s19, 0 }
 0x1e9   :  { %344 = shalt.err (%p380_p9)  }

</bundles_post_ra>
